<compile_context>
chip_gen: v7x
topology: tpu7x:2x2x1
jax: 0.10.0
libtpu: 0.0.40
codegen_flags: <defaults>
</compile_context>

<pallas_src>
import collections
import copy
import functools

import jax
import jax.numpy as jnp
from jax.experimental import pallas as pl
from jax.experimental.pallas import tpu as pltpu

_SUBLANE = 8
_TILE_B = 512           # row tile for the large-batch grid path


def _round_up(n, m):
    return ((n + m - 1) // m) * m


# ----------------------------------------------------------------------------
# Pallas kernel: fused  y = relu(x @ W1 + b1) @ W2s + b2s
# (output_scale already folded into W2s / b2s at prepare time).
# Weights arrive pre-transposed [in, out] in bf16; accumulation is f32.
# ----------------------------------------------------------------------------
def _mlp_fwd_kernel(x_ref, w1_ref, b1_ref, w2_ref, b2_ref, o_ref):
    x = x_ref[...].astype(w1_ref.dtype)                       # bf16 for the MXU
    h = jnp.dot(x, w1_ref[...], preferred_element_type=jnp.float32)
    h = jnp.maximum(h + b1_ref[...].astype(jnp.float32), 0.0)  # [B, Hp] ReLU
    h = h.astype(w2_ref.dtype)
    y = jnp.dot(h, w2_ref[...], preferred_element_type=jnp.float32)
    y = y + b2_ref[...].astype(jnp.float32)
    o_ref[...] = y.astype(o_ref.dtype)


def mlp_forward_pallas(x, w1_t, b1_row, w2_t, b2_row):
    """x: [B, D_in] f32; w1_t: [D_in, Hp]; b1_row: [1, Hp];
    w2_t: [Hp, D_out]; b2_row: [1, D_out]   (all bf16, scale pre-folded).
    Returns [B, D_out] f32 directly from the kernel (no wrapper slice)."""
    B, D_in = x.shape
    Hp = w1_t.shape[1]
    D_out = w2_t.shape[1]

    flops = 2 * B * (D_in * Hp + Hp * D_out)
    bytes_accessed = (x.size * x.dtype.itemsize
                      + w1_t.size * w1_t.dtype.itemsize
                      + b1_row.size * b1_row.dtype.itemsize
                      + w2_t.size * w2_t.dtype.itemsize
                      + b2_row.size * b2_row.dtype.itemsize
                      + B * D_out * x.dtype.itemsize)
    cost = pl.CostEstimate(flops=flops, transcendentals=0,
                           bytes_accessed=bytes_accessed)

    if B <= _TILE_B:
        # Tiny/medium batch: whole problem resident in VMEM, single grid point.
        # All block shapes equal the full arrays -> (8,128) exemption holds,
        # so the un-padded 32-wide output is legal (masked vst is negligible
        # at this size and beats an extra XLA slice op).
        full = lambda shape: pl.BlockSpec(shape, lambda: (0,) * len(shape))
        return pl.pallas_call(
            _mlp_fwd_kernel,
            out_shape=jax.ShapeDtypeStruct((B, D_out), x.dtype),
            grid=(),
            in_specs=[
                full((B, D_in)),
                full((D_in, Hp)),
                full((1, Hp)),
                full((Hp, D_out)),
                full((1, D_out)),
            ],
            out_specs=full((B, D_out)),
            cost_estimate=cost,
        )(x, w1_t, b1_row, w2_t, b2_row)

    # Large batch: 1-D grid over rows.  "parallel" lets v7x shard the batch
    # across its 2 TensorCores and lets BlockSpec double-buffer x / out on all
    # chips; weights use a constant index_map so they stay VMEM-resident.
    tm = _TILE_B
    nb = pl.cdiv(B, tm)
    Bp = nb * tm
    xp = x if Bp == B else jnp.pad(x, ((0, Bp - B), (0, 0)))
    out = pl.pallas_call(
        _mlp_fwd_kernel,
        out_shape=jax.ShapeDtypeStruct((Bp, D_out), x.dtype),
        grid=(nb,),
        in_specs=[
            pl.BlockSpec((tm, D_in), lambda i: (i, 0)),
            pl.BlockSpec((D_in, Hp), lambda i: (0, 0)),
            pl.BlockSpec((1, Hp), lambda i: (0, 0)),
            pl.BlockSpec((Hp, D_out), lambda i: (0, 0)),
            pl.BlockSpec((1, D_out), lambda i: (0, 0)),
        ],
        out_specs=pl.BlockSpec((tm, D_out), lambda i: (i, 0)),
        compiler_params=pltpu.CompilerParams(
            dimension_semantics=("parallel",)),
        cost_estimate=cost,
    )(xp, w1_t, b1_row, w2_t, b2_row)
    return out if Bp == B else out[:B]


# ----------------------------------------------------------------------------
# Inner "model": functional stand-in for the wrapped torch.nn.Module
# (Linear(32->64) -> ReLU -> Linear(64->32), plus an output_scale buffer).
# ----------------------------------------------------------------------------
class InnerMLP:

    def __init__(self, d_in=32, hidden=64, d_out=32, key=None):
        key = key if key is not None else jax.random.PRNGKey(0)
        k1, k2, k3, k4 = jax.random.split(key, 4)
        self.d_in, self.hidden, self.d_out = d_in, hidden, d_out
        # torch Linear layout: W [out, in], b [out].
        self._params = {
            "fc1.weight": (jax.random.normal(k1, (hidden, d_in), jnp.float32)
                           * (1.0 / jnp.sqrt(d_in))),
            "fc1.bias": jax.random.normal(k2, (hidden,), jnp.float32) * 0.01,
            "fc2.weight": (jax.random.normal(k3, (d_out, hidden), jnp.float32)
                           * (1.0 / jnp.sqrt(hidden))),
            "fc2.bias": jax.random.normal(k4, (d_out,), jnp.float32) * 0.01,
        }
        # Non-trainable buffer (extract_all_buffers puts this in `buffers`).
        self._buffers = {"output_scale": jnp.asarray(1.25, jnp.float32)}

    def prepare_inference_params(self, params, buffers):
        """One-time prep (init time, outside jit):
          - transpose to [in, out]
          - pad hidden to a multiple of 8 only (sublane), no 128 lane padding
          - fold output_scale into W2 / b2 (padded rows stay zero -> exact)
          - cast weights/biases to bf16 (MXU-native, halves weight DMA)."""
        w1, b1 = params["fc1.weight"], params["fc1.bias"]
        w2, b2 = params["fc2.weight"], params["fc2.bias"]
        scale = buffers["output_scale"].astype(jnp.float32)
        H, D_in = w1.shape
        D_out = w2.shape[0]
        Hp = _round_up(H, _SUBLANE)
        wdt = jnp.bfloat16

        w1_t = jnp.zeros((D_in, Hp), jnp.float32).at[:, :H].set(w1.T)
        b1_row = jnp.zeros((1, Hp), jnp.float32).at[:, :H].set(b1)
        w2_t = jnp.zeros((Hp, D_out), jnp.float32).at[:H, :].set(w2.T * scale)
        b2_row = (b2 * scale).reshape(1, D_out)

        prepared = {
            "fc1.weight_t": w1_t.astype(wdt),
            "fc1.bias_row": b1_row.astype(wdt),
            "fc2.weight_t": w2_t.astype(wdt),
            "fc2.bias_row": b2_row.astype(wdt),
        }
        # output_scale is fully folded into fc2 -> no runtime buffers needed.
        return prepared, {}

    def forward(self, reparam, x):
        return mlp_forward_pallas(
            x,
            reparam["fc1.weight_t"], reparam["fc1.bias_row"],
            reparam["fc2.weight_t"], reparam["fc2.bias_row"],
        )


def extract_all_buffers(m: InnerMLP):
    """Mirror of JittableModule's extract_all_buffers on the synthetic model."""
    return dict(m._params), dict(m._buffers)


# ----------------------------------------------------------------------------
# JittableModule analogue (forward-pass semantics): param/buffer extraction,
# parameter dedup, functional_call reparametrization, per-method jit caching.
# ----------------------------------------------------------------------------
class JittableModule:

    def __init__(self, m: InnerMLP, extra_jit_args={}, dedup_parameters=True):
        self.params, self.buffers = extract_all_buffers(m)
        self._model = m
        self._jitted = {}
        self._extra_jit_args = extra_jit_args
        self._extra_dumped_weights = {}
        if dedup_parameters:
            temp = collections.defaultdict(list)
            for k, v in self.params.items():
                temp[id(v)].append(k)
            for v in temp.values():
                if len(v) > 1:
                    self._extra_dumped_weights[v[0]] = v[1:]
                    for extra_key in v[1:]:
                        del self.params[extra_key]
        # One-time weight prep (transpose + pad + scale fold + bf16 cast) so the
        # jitted hot path contains only the fused Pallas kernel.
        self._prepared_params, self._prepared_buffers = (
            m.prepare_inference_params(self._dedup_restored_params(),
                                       self.buffers))

    def _dedup_restored_params(self):
        full = copy.copy(self.params)
        for k, dups in self._extra_dumped_weights.items():
            for new_key in dups:
                full[new_key] = full[k]
        return full

    def functional_call(self, method_name, params, buffers, *args, **kwargs):
        params_copy = copy.copy(params)
        params_copy.update(buffers)
        for k, dups in self._extra_dumped_weights.items():
            for new_key in dups:
                if k in params_copy:           # restore dedup'd aliases
                    params_copy[new_key] = params_copy[k]
        method = getattr(self._model, method_name)
        # torch_stateless._reparametrize_module equivalent: pass params explicitly.
        return method(params_copy, *args, **kwargs)

    def jittable_call(self, method_name, *args, **kwargs):
        if method_name not in self._jitted:
            jitted = jax.jit(
                functools.partial(self.functional_call, method_name),
                **self._extra_jit_args,
            )

            def jitted_forward(*a, **kw):
                return jitted(self._prepared_params, self._prepared_buffers,
                              *a, **kw)

            self._jitted[method_name] = jitted_forward
        return self._jitted[method_name](*args, **kwargs)

    def forward(self, *args, **kwargs):
        return self.jittable_call("forward", *args, **kwargs)

    __call__ = forward


# ----------------------------------------------------------------------------
if __name__ == "__main__":
    D_IN, HIDDEN, D_OUT, BATCH = 32, 64, 32, 8

    key = jax.random.PRNGKey(0)
    k_model, k_x, k_xl = jax.random.split(key, 3)

    model = InnerMLP(d_in=D_IN, hidden=HIDDEN, d_out=D_OUT, key=k_model)
    jm = JittableModule(model)

    x = jax.random.normal(k_x, (BATCH, D_IN), jnp.float32)
    out = jax.block_until_ready(jm(x))

    # --- references -----------------------------------------------------------
    p, b = jm.params, jm.buffers
    scale = b["output_scale"]
    w1b = p["fc1.weight"].T.astype(jnp.bfloat16)
    b1b = p["fc1.bias"].astype(jnp.bfloat16)
    w2b = (p["fc2.weight"].T * scale).astype(jnp.bfloat16)
    b2b = (p["fc2.bias"] * scale).astype(jnp.bfloat16)

    def ref_bf16(xx):          # same bf16 casts / f32 accumulation as the kernel
        h = jnp.dot(xx.astype(jnp.bfloat16), w1b,
                    preferred_element_type=jnp.float32)
        h = jnp.maximum(h + b1b.astype(jnp.float32), 0.0)
        y = jnp.dot(h.astype(jnp.bfloat16), w2b,
                    preferred_element_type=jnp.float32)
        return y + b2b.astype(jnp.float32)

    def ref_f32(xx):           # original torch-layout f32 semantics
        h = jnp.maximum(xx @ p["fc1.weight"].T + p["fc1.bias"], 0.0)
        return (h @ p["fc2.weight"].T + p["fc2.bias"]) * scale

    assert out.shape == (BATCH, D_OUT) and out.dtype == jnp.float32
    assert jnp.allclose(out, ref_bf16(x), atol=1e-3, rtol=1e-3)
    assert jnp.allclose(out, ref_f32(x), atol=5e-2, rtol=5e-2)

    # Large-batch path: 1-D row grid, weights resident, "parallel" semantics.
    x_big = jax.random.normal(k_xl, (1024, D_IN), jnp.float32)
    out_big = jax.block_until_ready(jm(x_big))
    assert out_big.shape == (1024, D_OUT) and out_big.dtype == jnp.float32
    assert jnp.allclose(out_big, ref_bf16(x_big), atol=1e-3, rtol=1e-3)

    print("KERNEL_OK")
</pallas_src>

<mosaic_0001>
module attributes {stable_mosaic.version = 11 : i64} {
  func.func @_mlp_fwd_kernel(%arg0: memref<8x32xf32, #tpu.memory_space<vmem>>, %arg1: memref<32x64xbf16, #tpu.memory_space<vmem>>, %arg2: memref<1x64xbf16, #tpu.memory_space<vmem>>, %arg3: memref<64x32xbf16, #tpu.memory_space<vmem>>, %arg4: memref<1x32xbf16, #tpu.memory_space<vmem>>, %arg5: memref<8x32xf32, #tpu.memory_space<vmem>>) attributes {dimension_semantics = [], scalar_prefetch = 0 : i64, scratch_operands = 0 : i64, tpu.core_type = #tpu.core_type<tc>} {
    %c0 = arith.constant 0 : index
    %c0_0 = arith.constant 0 : index
    %0 = vector.load %arg0[%c0, %c0_0] : memref<8x32xf32, #tpu.memory_space<vmem>>, vector<8x32xf32>
    %1 = arith.truncf %0 : vector<8x32xf32> to vector<8x32xbf16>
    %c0_1 = arith.constant 0 : index
    %c0_2 = arith.constant 0 : index
    %2 = vector.load %arg1[%c0_1, %c0_2] : memref<32x64xbf16, #tpu.memory_space<vmem>>, vector<32x64xbf16>
    %cst = arith.constant dense<0.000000e+00> : vector<8x64xf32>
    %3 = tpu.matmul %1, %2, %cst {dimension_numbers = #tpu.dot_dimension_numbers<[1], [0], [0], [1], [0, 0, 1, 1], [], []>} : vector<8x32xbf16>, vector<32x64xbf16>, vector<8x64xf32> -> vector<8x64xf32>
    %c0_3 = arith.constant 0 : index
    %c0_4 = arith.constant 0 : index
    %4 = vector.load %arg2[%c0_3, %c0_4] : memref<1x64xbf16, #tpu.memory_space<vmem>>, vector<1x64xbf16>
    %5 = arith.extf %4 : vector<1x64xbf16> to vector<1x64xf32>
    %6 = vector.broadcast %5 : vector<1x64xf32> to vector<8x64xf32>
    %7 = arith.addf %3, %6 : vector<8x64xf32>
    %cst_5 = arith.constant 0.000000e+00 : f32
    %8 = vector.broadcast %cst_5 : f32 to vector<8x64xf32>
    %9 = arith.maximumf %7, %8 : vector<8x64xf32>
    %10 = arith.truncf %9 : vector<8x64xf32> to vector<8x64xbf16>
    %c0_6 = arith.constant 0 : index
    %c0_7 = arith.constant 0 : index
    %11 = vector.load %arg3[%c0_6, %c0_7] : memref<64x32xbf16, #tpu.memory_space<vmem>>, vector<64x32xbf16>
    %cst_8 = arith.constant dense<0.000000e+00> : vector<8x32xf32>
    %12 = tpu.matmul %10, %11, %cst_8 {dimension_numbers = #tpu.dot_dimension_numbers<[1], [0], [0], [1], [0, 0, 1, 1], [], []>} : vector<8x64xbf16>, vector<64x32xbf16>, vector<8x32xf32> -> vector<8x32xf32>
    %c0_9 = arith.constant 0 : index
    %c0_10 = arith.constant 0 : index
    %13 = vector.load %arg4[%c0_9, %c0_10] : memref<1x32xbf16, #tpu.memory_space<vmem>>, vector<1x32xbf16>
    %14 = arith.extf %13 : vector<1x32xbf16> to vector<1x32xf32>
    %15 = vector.broadcast %14 : vector<1x32xf32> to vector<8x32xf32>
    %16 = arith.addf %12, %15 : vector<8x32xf32>
    %c0_11 = arith.constant 0 : index
    %c0_12 = arith.constant 0 : index
    %17 = vector.load %arg5[%c0_11, %c0_12] : memref<8x32xf32, #tpu.memory_space<vmem>>, vector<8x32xf32>
    tpu.vector_store %arg5[%c0_11, %c0_12], %16 {strides = array<i32>} : memref<8x32xf32, #tpu.memory_space<vmem>>, vector<8x32xf32>,
    return
  }
}

</mosaic_0001>

<bundles_post_ra>
// kernel: functional_call.1
= control target key start
LH: loop header
LB: loop body
LE: loop exit
PB: predicated region body
PF: predicated region fallthrough
CT: control target
= control target key end

     0   :  { %v258_v1 = vmov 0.0   ;;  %vm259_vm0 = vmmov 0   ;;  %vm46_vm1 = vcmask 261120   ;;  %s332_s0 = inlined_call_operand.vmem [shape: f32[8,32], index: 0, kind: input, shape index: {}]   ;;  %s333_s1 = inlined_call_operand.vmem [shape: bf16[32,64], index: 1, kind: input, shape index: {}]   ;;  %s334_s2 = inlined_call_operand.vmem [shape: bf16[1,64], index: 2, kind: input, shape index: {}]   ;;  %s335_s3 = inlined_call_operand.vmem [shape: bf16[64,32], index: 3, kind: input, shape index: {}]   ;;  %s336_s4 = inlined_call_operand.vmem [shape: bf16[1,32], index: 4, kind: input, shape index: {}]   ;;  %s337_s5 = inlined_call_operand.hbm [shape: f32[8,32], index: 5, kind: output, shape index: {}]  }
   0x1   :  { %v228_v0 = vld [vmem:[%s333_s1] sm:$0xff]   ;;  %205 = vmatprep.subr.bf16.mxu0 %v258_v1  ;;  %v229_v2 = vld [vmem:[%s333_s1 + $0x8] sm:$0xff]   ;;  %213 = vmatprep.subr.bf16.mxu1 %v258_v1 }
   0x2   :  { %206 = vmatpush3.bf16.msra.mxu0 %v228_v0  ;;  %209 = vmatprep.mubr.msk.bf16.mxu0 %vm259_vm0, %v258_v1  ;;  %v22_v3 = vld [vmem:[%s332_s0] sm:$0xff]  ;;  %v231_v6 = vld [vmem:[%s335_s3 + $0x8] sm:$0xff]  }
   0x3   :  { %207 = vmatprep.subr.bf16.mxu0 %v258_v1  ;;  %v230_v4 = vld [vmem:[%s335_s3] sm:$0xff]   ;;  %221 = vmatprep.mubr.msk.bf16.mxu1 %vm259_vm0, %v258_v1  ;;  %v23_v5 = vpack.c.bf16 %v22_v3, %v22_v3 }
   0x4   :  { %214 = vmatpush3.bf16.msra.mxu1 %v230_v4 }
   0x5   :  { %215 = vmatprep.subr.bf16.mxu1 %v258_v1 }
   0x6   :  { %208 = vmatpush3.bf16.msra.mxu0 %v229_v2 }
   0x7   :  { %10 = vsyncpa [#allocation3], 0  ;;  %v232_v7 = vld [vmem:[%s335_s3 + $0x10] sm:$0xff]   ;;  %v233_v8 = vld [vmem:[%s335_s3 + $0x18] sm:$0xff]   ;;  %v30_v9 = vlaneseq  ;;  %vm130_vm2 = vcmask 523264   ;;  %s260_s8 = smov [#allocation2]  }
   0x8   :  { %216 = vmatpush3.bf16.msra.mxu1 %v231_v6  ;;  %v28_v11 = vld [vmem:[%s334_s2] sm:$0x1]  ;;  %s181_s2 = sshll.u32 %s260_s8, 4  ;;  %s182_s2 = int_to_ptr.vmem [resolvable:$true] %s181_s2 }
   0x9   :  { %210 = vmatmul.mubr.msk.bf16.vlgmr.msra.gmra.mrb[0].mxu0 %vm46_vm1, %v23_v5  ;;  %217 = vmatprep.subr.bf16.mxu1 %v258_v1  ;;  %v31_v10 = vshrl.u32 %v30_v9, 7  ;;  %v29_v12 = vunpack.c.l.bf16 %v28_v11  ;;  %v100_v22 = vld [vmem:[%s336_s4] sm:$0x1]  ;;  %s234_s9 = scalar_lea.vmem %s182_s2, 128  ;;  %p239_p1 = scmp.lt.s32.totalorder %s182_s2, %s182_s2 }
   0xa   :  { %v101_v23 = vunpack.c.l.bf16 %v100_v22  ;;  %p235_p0 = scmp.ne.s32.totalorder %s182_s2, %s234_s9  ;;  %p240_p2 = scmp.lt.s32.totalorder %s234_s9, %s234_s9 }
   0xb   :  { %v32_v13 = vsub.s32 0, %v31_v10 }
   0xc   :  { %218 = vmatpush3.bf16.msra.mxu1 %v232_v7  ;;  %p241_p3 = por %p240_p2, %p239_p1 }
   0xd   :  { %219 = vmatprep.subr.bf16.mxu1 %v258_v1  ;;  %v33_v14 = vrot.slane %v29_v12, %v32_v13  ;;  %v105_v24 = vrot.slane %v101_v23, %v32_v13 }
   0xe   :  { %p242_p4 = pnand %p241_p3, %p235_p0 }
  0x10   :  { %220 = vmatpush3.bf16.msra.mxu1 %v233_v8 }
  0xdc   :  { %v84_v15 = vpop.f32.mrb[0].mxu0 }
  0xdd   :  { %v85_v16 = vadd.f32 %v84_v15, %v33_v14  ;;  %v211_v17 = vpop.f32.mrb[1].mxu0 }
  0xde   :  { %v87_v18 = vpop.f32.mrb[2].mxu0 }
  0xdf   :  { %v90_v19 = vmax.f32 %v85_v16, 0.0  ;;  %v212_v20 = vpop.f32.mrb[3].mxu0 }
  0xe1   :  { %v91_v21 = vpack.c.bf16 %v90_v19, %v90_v19 }
  0xe3   :  { %222 = vmatmul.mubr.msk.bf16.vlgmr.msra.gmra.mrb[0].mxu1 %vm130_vm2, %v91_v21 }
 0x1b6   :  { %v168_v25 = vpop.f32.mrb[0].mxu1 }
 0x1b7   :  { %v169_v26 = vadd.f32 %v168_v25, %v105_v24  ;;  %v223_v27 = vpop.f32.mrb[1].mxu1 }
 0x1b8   :  { %v171_v28 = vpop.f32.mrb[2].mxu1 }
 0x1b9   :  { %174 = vst.msk [vmem:[#allocation2] sm:$0xff] %vm46_vm1, %v169_v26  ;;  %v224_v29 = vpop.f32.mrb[3].mxu1 }
 0x1ba   :  { %245 = shalt.err (!%p242_p4)
}
 0x1bb   :  { %s246_s11 = scalar_lea.hbm %s337_s5, 128 }
 0x1bc   :  { %p247_p5 = scmp.ne.s32.totalorder %s337_s5, %s246_s11  ;;  %p250_p6 = scmp.lt.u32.totalorder %s246_s11, %s337_s5 }
 0x1be   :  { %p252_p7 = pnand %p250_p6, %p247_p5 }
 0x1c0   :  { %255 = shalt.err (!%p252_p7)
}
 0x1c1   :  { %184 = dma.vmem_to_hbm [thread:$0]  %s182_s2, 128, %s337_s5, [#allocation3]  }
 0x1c2   :  { %256 = dma.done.wait [#allocation3], 128  }
 0x1c3   :  { %257 = vsyncadd [#allocation3], 4294967168 }
 0x1c4   :  { %188 = vsyncpa [#allocation3], 1 }

</bundles_post_ra>
